<compile_context>
chip_gen: v5e
topology: v5e:2x2
jax: 0.10.0
libtpu: 0.0.40
codegen_flags: <defaults>
</compile_context>

<pallas_src>
import math

import jax
import jax.numpy as jnp
from jax.experimental import pallas as pl
from jax.experimental.pallas import tpu as pltpu

_LANES = 128            # lane width; one row = 64 interleaved (u, v) points
_MAX_TR = 2048          # max sublane rows per grid step (1 MiB/buffer @ f32)
_MIN_STEPS = 2          # aim for >=2 grid steps (v7x megacore)

_PI2 = math.pi ** 2                     # mask threshold on the UNnormalized norm^2
_TWO_PI2 = 2.0 * math.pi ** 2           # 2 * pi^2
_TWO_SQRT2_PI = 2.0 * math.sqrt(2.0) * math.pi
_HALF_OVER_PI = 0.5 / math.pi


def _round_up(x, m):
    return ((x + m - 1) // m) * m


# --------------------------------------------------------------------------
# One-time probe: which way does pltpu.roll rotate the lanes?
# --------------------------------------------------------------------------
_PARTNER_SHIFTS = None


def _detect_roll_shifts():
    def probe_kernel(x_ref, o_ref):
        o_ref[...] = pltpu.roll(x_ref[...], 1, axis=1)

    probe_in = jnp.tile(jnp.arange(_LANES, dtype=jnp.float32)[None, :], (8, 1))
    rolled = pl.pallas_call(
        probe_kernel,
        out_shape=jax.ShapeDtypeStruct((8, _LANES), jnp.float32),
    )(probe_in)
    np_like = bool(rolled[0, 1] == probe_in[0, 0])   # out[i] == in[i-1] ?
    # Even lanes hold u (partner v at lane+1); odd lanes hold v (partner at lane-1).
    return (_LANES - 1, 1) if np_like else (1, _LANES - 1)


def _partner_shifts():
    global _PARTNER_SHIFTS
    if _PARTNER_SHIFTS is None:
        _PARTNER_SHIFTS = _detect_roll_shifts()
    return _PARTNER_SHIFTS


# --------------------------------------------------------------------------
# Kernel
# --------------------------------------------------------------------------
def _make_circle2box_kernel(even_shift, odd_shift):
    def kernel(x_ref, o_ref):
        # x_ref / o_ref: (TR, 128) f32, lanes interleaved as [u0 v0 u1 v1 ...].
        a = x_ref[...]
        aa = a * a

        # Partner coordinate squared: lane i needs lane i^1. Two 1-lane rolls
        # (XLU slots, idle here) + a parity select. Pairs never straddle a row
        # boundary (rows are 128 wide, pairs start at even offsets).
        lane = jax.lax.broadcasted_iota(jnp.int32, a.shape, 1)
        is_even = (lane & 1) == 0
        bb = jnp.where(is_even,
                       pltpu.roll(aa, even_shift, axis=1),
                       pltpu.roll(aa, odd_shift, axis=1))

        # 1/pi normalization folded into constants:
        #   sx = 0.5/pi * (sqrt(2*pi^2 + A^2 - B^2 + 2*sqrt2*pi*A)
        #                  - sqrt(2*pi^2 + A^2 - B^2 - 2*sqrt2*pi*A))
        d = aa - bb
        p = _TWO_PI2 + d
        t = _TWO_SQRT2_PI * a
        # NOTE: do NOT clamp the sqrt args -- NaNs must survive to the keep-mask
        # below so the component is zeroed (PyTorch semantics).
        s = _HALF_OVER_PI * (jnp.sqrt(p + t) - jnp.sqrt(p - t))

        inside = (aa + bb) < _PI2        # ||x/pi||^2 < 1
        keep = inside & (s == s)         # fuse disk mask with NaN zeroing
        o_ref[...] = jnp.where(keep, s, 0.0)

    return kernel


# --------------------------------------------------------------------------
# Wrapper
# --------------------------------------------------------------------------
def circle2box_forward(inputs, *, min_kernel_batch=1024, force_kernel=False):
    """Circle2Box.forward.  inputs: (B, 2) float array -> (B, 2) float32."""
    inputs = jnp.asarray(inputs, jnp.float32)
    B = inputs.shape[0]
    if B == 0:
        return jnp.zeros((0, 2), jnp.float32)

    # Small-B fast path: launch overhead dwarfs the work.
    if B < min_kernel_batch and not force_kernel:
        return _reference_forward(inputs)

    n = 2 * B
    R = pl.cdiv(n, _LANES)
    R8 = _round_up(R, 8)            # pad rows only to a multiple of 8
    n_pad = R8 * _LANES

    flat = inputs.reshape(-1)       # contiguous -> free reshape
    if n_pad != n:
        flat = jnp.pad(flat, (0, n_pad - n))
    x = flat.reshape(R8, _LANES)    # free reshape

    # >=2 grid steps where possible (v7x megacore), capped so the in+out
    # double-buffered footprint stays ~<=4 MiB (fits all generations' defaults).
    TR = max(8, min(_MAX_TR, _round_up(pl.cdiv(R8, _MIN_STEPS), 8)))
    grid = (pl.cdiv(R8, TR),)

    kernel = _make_circle2box_kernel(*_partner_shifts())

    out = pl.pallas_call(
        kernel,
        out_shape=jax.ShapeDtypeStruct((R8, _LANES), jnp.float32),
        grid=grid,
        in_specs=[pl.BlockSpec((TR, _LANES), lambda i: (i, 0))],
        out_specs=pl.BlockSpec((TR, _LANES), lambda i: (i, 0)),
        compiler_params=pltpu.CompilerParams(
            dimension_semantics=("parallel",)),
    )(x)

    out_flat = out.reshape(-1)
    if n_pad != n:
        out_flat = out_flat[:n]
    return out_flat.reshape(B, 2)


def _reference_forward(inputs):
    """Pure-JAX reference mirroring the PyTorch code (also the small-B path)."""
    x = jnp.asarray(inputs, jnp.float32) / math.pi
    norm_x = jnp.linalg.norm(x, axis=1)
    mask = norm_x < 1.0
    u = x[:, 0]
    v = x[:, 1]
    u_v = u ** 2 - v ** 2
    sq2 = math.sqrt(2.0)
    sx = (0.5 * jnp.sqrt(2 + u_v + 2 * u * sq2)
          - 0.5 * jnp.sqrt(2 + u_v - 2 * u * sq2))
    sy = (0.5 * jnp.sqrt(2 - u_v + 2 * v * sq2)
          - 0.5 * jnp.sqrt(2 - u_v - 2 * v * sq2))
    y1 = jnp.stack([sx, sy], axis=1)
    y_out = mask[:, None].astype(y1.dtype) * y1
    y_out = jnp.where(jnp.isnan(y_out), 0.0, y_out)
    return y_out


# TODO(synk): jacobian / jac_inv / backwards of the PyTorch module are not part
# of the forward pass and are not implemented here.


if __name__ == "__main__":
    key = jax.random.PRNGKey(0)
    k1, k2 = jax.random.split(key)

    # Small batch (module-typical shape); force the Pallas kernel path.
    B_small = 8
    x_small = jax.random.normal(k1, (B_small, 2), dtype=jnp.float32) * 2.5
    out_small = jax.block_until_ready(
        circle2box_forward(x_small, force_kernel=True))
    ref_small = jax.block_until_ready(_reference_forward(x_small))
    assert out_small.shape == (B_small, 2)
    assert jnp.allclose(out_small, ref_small, atol=1e-5, rtol=1e-5)

    # Medium batch: exercises flat-pad, a 2-step grid and the megacore path.
    B_med = 6000
    x_med = jax.random.normal(k2, (B_med, 2), dtype=jnp.float32) * 2.5
    out_med = jax.block_until_ready(circle2box_forward(x_med))
    ref_med = jax.block_until_ready(_reference_forward(x_med))
    assert out_med.shape == (B_med, 2)
    assert jnp.allclose(out_med, ref_med, atol=1e-5, rtol=1e-5)

    print("KERNEL_OK")
</pallas_src>

<mosaic_0001>
module attributes {stable_mosaic.version = 11 : i64} {
  func.func @probe_kernel(%arg0: memref<8x128xf32, #tpu.memory_space<vmem>>, %arg1: memref<8x128xf32, #tpu.memory_space<vmem>>) attributes {dimension_semantics = [], scalar_prefetch = 0 : i64, scratch_operands = 0 : i64, tpu.core_type = #tpu.core_type<tc>} {
    %c0 = arith.constant 0 : index
    %c0_0 = arith.constant 0 : index
    %0 = vector.load %arg0[%c0, %c0_0] : memref<8x128xf32, #tpu.memory_space<vmem>>, vector<8x128xf32>
    %c1_i32 = arith.constant 1 : i32
    %1 = tpu.dynamic_rotate %0 by %c1_i32 dim 1 : vector<8x128xf32>, i32 -> vector<8x128xf32>
    %c0_1 = arith.constant 0 : index
    %c0_2 = arith.constant 0 : index
    %2 = vector.load %arg1[%c0_1, %c0_2] : memref<8x128xf32, #tpu.memory_space<vmem>>, vector<8x128xf32>
    tpu.vector_store %arg1[%c0_1, %c0_2], %1 {strides = array<i32>} : memref<8x128xf32, #tpu.memory_space<vmem>>, vector<8x128xf32>,
    return
  }
}

</mosaic_0001>

<bundles_post_ra>
// kernel: tpu_custom_call.1
= control target key start
LH: loop header
LB: loop body
LE: loop exit
PB: predicated region body
PF: predicated region fallthrough
CT: control target
= control target key end

     0   :  { %6 = vsyncpa [#allocation3], 0  ;;  %s118_s0 = inlined_call_operand.hbm [shape: f32[8,128], index: 0, kind: input, shape index: {}]   ;;  %s119_s1 = inlined_call_operand.hbm [shape: f32[8,128], index: 1, kind: output, shape index: {}]  }
   0x1   :  { %7 = vsyncpa [#allocation4], 0  ;;  %s13_s8 = sshll.u32 %s118_s0, 4  ;;  %s99_s9 = smov [#allocation2]   ;;  %s14_s8 = int_to_ptr.hbm [resolvable:$true] %s13_s8 }
   0x2   :  { %s15_s10 = sshll.u32 %s99_s9, 4  ;;  %s16_s10 = int_to_ptr.vmem [resolvable:$true] %s15_s10 }
   0x3   :  { %18 = dma.hbm_to_vmem [thread:$0]  %s14_s8, 128, %s16_s10, [#allocation3]  }
   0x4   :  { %95 = dma.done.wait [#allocation3], 128  }
   0x5   :  { %96 = vsyncadd [#allocation3], 4294967168  ;;  %v23_v0 = vld [vmem:[#allocation2] sm:$0xff]  ;;  %s100_s11 = smov 1   ;;  %s101_s12 = smov [#allocation5]  }
   0x6   :  { %24 = vrot.lane.b32.xlu0 %v23_v0, %s100_s11  ;;  %s32_s13 = sshll.u32 %s101_s12, 4  ;;  %s34_s16 = sshll.u32 %s119_s1, 4  ;;  %s33_s13 = int_to_ptr.vmem [resolvable:$true] %s32_s13  ;;  %s35_s16 = int_to_ptr.hbm [resolvable:$true] %s34_s16 }
  0x78   :  { %v25_v1 = vpop.permute.xlu0 %24 }
  0x79   :  { %26 = vst [vmem:[#allocation5] sm:$0xff] %v25_v1 }
  0x7a   :  { %37 = dma.vmem_to_hbm [thread:$0]  %s33_s13, 128, %s35_s16, [#allocation4]  }
  0x7b   :  { %97 = dma.done.wait [#allocation4], 128  }
  0x7c   :  { %98 = vsyncadd [#allocation4], 4294967168 }
  0x7d   :  { %42 = vsyncpa [#allocation3], 1 }
  0x7e   :  { %43 = vsyncpa [#allocation4], 1 }

</bundles_post_ra>
